<compile_context>
chip_gen: v6e
topology: v6e:2x2x1
jax: 0.10.0
libtpu: 0.0.40
codegen_flags: <defaults>
</compile_context>

<pallas_src>
import functools
from typing import NamedTuple, Optional

import jax
import jax.numpy as jnp
from jax.experimental import pallas as pl
from jax.experimental.pallas import tpu as pltpu


def _round_up(x, m):
    return ((x + m - 1) // m) * m


class _Layout(NamedTuple):
    slab_w: int                 # lane width of the fused [Wp | Wr] weight slab
    out_w: int                  # lane width of the kernel's output slab
    split: Optional[int]        # lane offset of risk half (128-aligned slice) or None
    risk_shift: Optional[int]   # pltpu.roll amount aligning risk lanes to lane 0, or None


def _layout(dout: int) -> _Layout:
    if dout % 128 == 0:
        # Perfectly lane-aligned: no padding, no output slice afterwards.
        return _Layout(slab_w=2 * dout, out_w=dout, split=dout, risk_shift=None)
    if 2 * dout <= 128:
        # Small Dout: one 128-lane slab; split via XLU rotate (see header).
        return _Layout(slab_w=128, out_w=128, split=None, risk_shift=128 - dout)
    dhalf = _round_up(dout, 128)
    return _Layout(slab_w=2 * dhalf, out_w=dhalf, split=dhalf, risk_shift=None)


class FusedTauParams(NamedTuple):
    w: jax.Array    # (Din, slab_w) fused [Wp | Wr] slab (f32 or matmul_dtype)
    b: jax.Array    # (1, slab_w) fused [bp | br] bias (f32)
    dout: int


def fuse_tau_params(wp, bp, wr, br, *, matmul_dtype=None) -> FusedTauParams:
    """Pack Wp/Wr (Din, Dout) and biases into one lane-aligned slab.

    Call ONCE per parameter set and reuse for every forward call -- rebuilding
    the slab per call would re-write the whole weight matrix in HBM before the
    kernel even starts.  Uses pad + concatenate (XLA-fusable), not at[].set.
    """
    din, dout = wp.shape
    L = _layout(dout)
    wp32, wr32 = wp.astype(jnp.float32), wr.astype(jnp.float32)
    bp32 = bp.astype(jnp.float32).reshape(1, dout)
    br32 = br.astype(jnp.float32).reshape(1, dout)

    def pack(a_p, a_r):
        rows = a_p.shape[0]
        if L.risk_shift is None:                       # two lane-aligned halves
            pad = L.split - dout
            if pad:
                a_p = jnp.pad(a_p, ((0, 0), (0, pad)))
                a_r = jnp.pad(a_r, ((0, 0), (0, pad)))
            return jnp.concatenate([a_p, a_r], axis=1)
        # Single 128-lane slab: [P(0:D) | R(D:2D) | zeros | R(128-D:128)]
        parts = [a_p, a_r]
        used = 2 * dout
        if L.slab_w - dout >= used:
            # Mirror the risk columns into the tail padding lanes: zero cost
            # (they were padding) and makes the rotate-based split independent
            # of the rotate-direction convention.
            gap = L.slab_w - dout - used
            if gap:
                parts.append(jnp.zeros((rows, gap), jnp.float32))
            parts.append(a_r)
        else:
            parts.append(jnp.zeros((rows, L.slab_w - used), jnp.float32))
        return jnp.concatenate(parts, axis=1)

    w = pack(wp32, wr32)
    b = pack(bp32, br32)
    if matmul_dtype is not None:
        # Low-precision MXU inputs (e.g. bf16 on v6e/v7x); accumulation stays f32.
        w = w.astype(matmul_dtype)
    return FusedTauParams(w=w, b=b, dout=dout)


def tau_kernel(x_ref, w_ref, b_ref, o_ref, *, split, risk_shift,
               epsilon, alpha, beta, min_denominator):
    """One grid step: (block_b, Din) rows -> (block_b, out_w) tau values."""
    x = x_ref[...]                                     # (block_b, Din)
    # Single fused MXU pass for both linear layers, f32 accumulation.
    lin = jnp.dot(x, w_ref[...], preferred_element_type=jnp.float32) + b_ref[...]

    if risk_shift is None:
        prog_lin = lin[:, :split]                      # lane-aligned static slices
        risk_lin = lin[:, split:]
    else:
        prog_lin = lin                                 # progress sits in lanes [0, Dout)
        risk_lin = pltpu.roll(lin, shift=risk_shift, axis=1)   # XLU rotate, ~free slot

    progress = jnp.tanh(prog_lin)                      # EUP
    risk = jnp.maximum(risk_lin, 0.0)                  # relu (VPU)

    num = progress + alpha
    den = jnp.maximum(risk + (beta + epsilon), min_denominator)

    # One EUP vrcp + one Newton-Raphson refine on the VPU (plenty of slack);
    # relative error ~1e-7, well inside the 1e-5 tolerance.
    r = pl.reciprocal(den, approx=True)
    r = r * (2.0 - den * r)

    tau = jnp.tanh(num * r)
    # clamp(tau, -10, 10) from the PyTorch module is dead code: tanh ∈ [-1, 1].
    o_ref[...] = tau.astype(o_ref.dtype)


def tau_r_layer_fused(x, params: FusedTauParams, *, epsilon=1e-6, alpha=0.1,
                      beta=0.1, min_denominator=1e-5, block_b=None):
    """Hot-path forward: x (B, Din) + pre-fused params -> tau (B, Dout)."""
    if x.ndim == 1:
        x = x[None, :]
    B, din = x.shape
    dout = params.dout
    L = _layout(dout)
    w, b = params.w, params.b
    assert w.shape == (din, L.slab_w), "fused params do not match x's feature dim"

    matmul_dtype = w.dtype
    if x.dtype != matmul_dtype:
        x = x.astype(matmul_dtype)
    elt_in = jnp.dtype(matmul_dtype).itemsize
    row_align = 8 if elt_in >= 4 else 16               # bf16 sublane packing wants 16

    # Resident (single-buffered) weight + sublane-padded bias bytes; per-row tile bytes.
    weight_bytes = din * L.slab_w * elt_in + 8 * L.slab_w * 4
    per_row = 2 * (din * elt_in + L.out_w * 4)         # x + out tiles, double-buffered

    if block_b is None:
        # Derive rows/step from a VMEM tile budget: 32 MiB of tiles leaves
        # headroom on v7x's 64 MiB and is comfortable on v5e/v6e's 128 MiB.
        tile_budget = 32 << 20
        rows_vmem = max((tile_budget - weight_bytes) // per_row, row_align)
        rows_vmem = (rows_vmem // row_align) * row_align
        block_b = min(rows_vmem, 8192, _round_up(B, row_align))
        if B >= 1024:
            # Keep >= 2 grid steps on large batches so the "parallel" batch
            # axis can shard across v7x's two TensorCores.
            block_b = min(block_b, _round_up(pl.cdiv(B, 2), row_align))
        block_b = max(block_b, row_align)
    else:
        block_b = max(_round_up(block_b, row_align), row_align)

    # Ragged batches: cdiv grid, last block is read-padded / write-clipped by
    # Pallas -- no jnp.pad copy of x, no batch slice of the output.
    grid_b = pl.cdiv(B, block_b)

    # Actual footprint + 25% headroom, capped under v7x's 64 MiB physical VMEM.
    footprint = 2 * block_b * din * elt_in + 2 * block_b * L.out_w * 4 + weight_bytes
    vmem_limit = max(min(int(footprint * 1.25) + (1 << 20), 48 << 20), 4 << 20)

    kernel = functools.partial(
        tau_kernel, split=L.split, risk_shift=L.risk_shift, epsilon=epsilon,
        alpha=alpha, beta=beta, min_denominator=min_denominator)

    # TODO(synk): for very large Din on v7x (64 MiB VMEM) add a trailing
    # "arbitrary" K-tiling grid axis with an f32 VMEM accumulator instead of
    # keeping the full (Din, slab_w) weight slab resident.
    out = pl.pallas_call(
        kernel,
        out_shape=jax.ShapeDtypeStruct((B, L.out_w), jnp.float32),
        grid_spec=pltpu.PrefetchScalarGridSpec(
            num_scalar_prefetch=0,
            grid=(grid_b,),
            in_specs=[
                pl.BlockSpec((block_b, din), lambda i: (i, 0)),      # x tile
                pl.BlockSpec((din, L.slab_w), lambda i: (0, 0),      # fused W: resident,
                             pipeline_mode=pl.Buffered(1)),          #  single-buffered
                pl.BlockSpec((1, L.slab_w), lambda i: (0, 0),        # fused bias
                             pipeline_mode=pl.Buffered(1)),
            ],
            out_specs=pl.BlockSpec((block_b, L.out_w), lambda i: (i, 0)),
        ),
        compiler_params=pltpu.CompilerParams(
            dimension_semantics=("parallel",),
            vmem_limit_bytes=vmem_limit),
    )(x, w, b)

    # Only lane padding (if any) is sliced away; no batch slice needed.
    return out if L.out_w == dout else out[:, :dout]


def tau_r_layer(x, wp, bp, wr, br, *, epsilon=1e-6, alpha=0.1, beta=0.1,
                min_denominator=1e-5, block_b=None, matmul_dtype=None):
    """One-shot convenience API.  For repeated calls, fuse once with
    fuse_tau_params() and call tau_r_layer_fused() so the weight re-packing
    stays out of the per-call hot path."""
    params = fuse_tau_params(wp, bp, wr, br, matmul_dtype=matmul_dtype)
    return tau_r_layer_fused(x, params, epsilon=epsilon, alpha=alpha, beta=beta,
                             min_denominator=min_denominator, block_b=block_b)


def _xavier_uniform(key, fan_in, fan_out, gain):
    # Matches nn.init.xavier_uniform_ semantics (deterministic synthetic init).
    limit = gain * jnp.sqrt(6.0 / (fan_in + fan_out))
    return jax.random.uniform(key, (fan_in, fan_out), jnp.float32, -limit, limit)


def _reference(x, wp, bp, wr, br, epsilon=1e-6, alpha=0.1, beta=0.1,
               min_denominator=1e-5):
    progress = jnp.tanh(x @ wp + bp)
    risk = jax.nn.relu(x @ wr + br)
    num = progress + alpha
    den = jnp.maximum(risk + beta + epsilon, min_denominator)
    return jnp.clip(jnp.tanh(num / den), -10.0, 10.0)


if __name__ == "__main__":
    key = jax.random.PRNGKey(0)
    k_x, k_wp, k_wr, k_x2, k_wp3, k_wr3, k_x3 = jax.random.split(key, 7)

    batch, input_dim, output_dim = 64, 32, 32

    x = jax.random.normal(k_x, (batch, input_dim), jnp.float32)
    # Deterministic synthetic parameters (xavier_uniform gain=0.1, zero biases).
    wp = _xavier_uniform(k_wp, input_dim, output_dim, gain=0.1)
    bp = jnp.zeros((output_dim,), jnp.float32)
    wr = _xavier_uniform(k_wr, input_dim, output_dim, gain=0.1)
    br = jnp.zeros((output_dim,), jnp.float32)

    # Fuse the weights ONCE (outside the hot path) and reuse across calls.
    params = fuse_tau_params(wp, bp, wr, br)

    out = jax.block_until_ready(tau_r_layer_fused(x, params))
    ref = _reference(x, wp, bp, wr, br)
    assert out.shape == (batch, output_dim)
    assert jnp.allclose(out, ref, atol=1e-5, rtol=1e-5), "mismatch vs reference"

    # Ragged batch (B=13): cdiv grid + write-clipped last block, no jnp.pad of x.
    x2 = jax.random.normal(k_x2, (13, input_dim), jnp.float32)
    out2 = jax.block_until_ready(tau_r_layer_fused(x2, params))
    ref2 = _reference(x2, wp, bp, wr, br)
    assert out2.shape == (13, output_dim)
    assert jnp.allclose(out2, ref2, atol=1e-5, rtol=1e-5), "mismatch (ragged batch)"

    # Lane-aligned output path (Dout % 128 == 0): no padding, no output slice.
    out_dim3 = 128
    wp3 = _xavier_uniform(k_wp3, input_dim, out_dim3, gain=0.1)
    bp3 = jnp.zeros((out_dim3,), jnp.float32)
    wr3 = _xavier_uniform(k_wr3, input_dim, out_dim3, gain=0.1)
    br3 = jnp.zeros((out_dim3,), jnp.float32)
    x3 = jax.random.normal(k_x3, (32, input_dim), jnp.float32)
    out3 = jax.block_until_ready(tau_r_layer(x3, wp3, bp3, wr3, br3))
    ref3 = _reference(x3, wp3, bp3, wr3, br3)
    assert out3.shape == (32, out_dim3)
    assert jnp.allclose(out3, ref3, atol=1e-5, rtol=1e-5), "mismatch (Dout=128 path)"

    print("KERNEL_OK")
</pallas_src>

<mosaic_0001>
module attributes {stable_mosaic.version = 11 : i64} {
  func.func @tau_kernel(%arg0: i32, %arg1: memref<64x32xf32, #tpu.memory_space<vmem>>, %arg2: memref<32x128xf32, #tpu.memory_space<vmem>>, %arg3: memref<1x128xf32, #tpu.memory_space<vmem>>, %arg4: memref<64x128xf32, #tpu.memory_space<vmem>>) attributes {dimension_semantics = [#tpu.dimension_semantics<parallel>], iteration_bounds = array<i64: 1>, scalar_prefetch = 0 : i64, scratch_operands = 0 : i64, tpu.core_type = #tpu.core_type<tc>, window_params = [{transform_indices = @transform_0, window_bounds = array<i64: 64, 32>}, {pipeline_mode = #tpu.pipeline_mode<synchronous>, transform_indices = @transform_1, window_bounds = array<i64: 32, 128>}, {pipeline_mode = #tpu.pipeline_mode<synchronous>, transform_indices = @transform_2, window_bounds = array<i64: 1, 128>}, {transform_indices = @transform_3, window_bounds = array<i64: 64, 128>}]} {
    %c0 = arith.constant 0 : index
    %c0_0 = arith.constant 0 : index
    %0 = vector.load %arg1[%c0, %c0_0] : memref<64x32xf32, #tpu.memory_space<vmem>>, vector<64x32xf32>
    %c0_1 = arith.constant 0 : index
    %c0_2 = arith.constant 0 : index
    %1 = vector.load %arg2[%c0_1, %c0_2] : memref<32x128xf32, #tpu.memory_space<vmem>>, vector<32x128xf32>
    %cst = arith.constant dense<0.000000e+00> : vector<64x128xf32>
    %2 = tpu.matmul %0, %1, %cst {dimension_numbers = #tpu.dot_dimension_numbers<[1], [0], [0], [1], [0, 0, 1, 1], [], []>} : vector<64x32xf32>, vector<32x128xf32>, vector<64x128xf32> -> vector<64x128xf32>
    %c0_3 = arith.constant 0 : index
    %c0_4 = arith.constant 0 : index
    %3 = vector.load %arg3[%c0_3, %c0_4] : memref<1x128xf32, #tpu.memory_space<vmem>>, vector<1x128xf32>
    %4 = vector.broadcast %3 : vector<1x128xf32> to vector<64x128xf32>
    %5 = arith.addf %2, %4 : vector<64x128xf32>
    %c96_i32 = arith.constant 96 : i32
    %6 = tpu.dynamic_rotate %5 by %c96_i32 dim 1 : vector<64x128xf32>, i32 -> vector<64x128xf32>
    %7 = math.tanh %5 : vector<64x128xf32>
    %cst_5 = arith.constant 0.000000e+00 : f32
    %8 = vector.broadcast %cst_5 : f32 to vector<64x128xf32>
    %9 = arith.maximumf %6, %8 : vector<64x128xf32>
    %cst_6 = arith.constant 1.000000e-01 : f32
    %10 = vector.broadcast %cst_6 : f32 to vector<64x128xf32>
    %11 = arith.addf %7, %10 : vector<64x128xf32>
    %cst_7 = arith.constant 1.000010e-01 : f32
    %12 = vector.broadcast %cst_7 : f32 to vector<64x128xf32>
    %13 = arith.addf %9, %12 : vector<64x128xf32>
    %cst_8 = arith.constant 9.99999974E-6 : f32
    %14 = vector.broadcast %cst_8 : f32 to vector<64x128xf32>
    %15 = arith.maximumf %13, %14 : vector<64x128xf32>
    %16 = tpu.reciprocal %15 {approx = true} : vector<64x128xf32> -> vector<64x128xf32>
    %17 = arith.mulf %15, %16 : vector<64x128xf32>
    %cst_9 = arith.constant 2.000000e+00 : f32
    %18 = vector.broadcast %cst_9 : f32 to vector<64x128xf32>
    %19 = arith.subf %18, %17 : vector<64x128xf32>
    %20 = arith.mulf %16, %19 : vector<64x128xf32>
    %21 = arith.mulf %11, %20 : vector<64x128xf32>
    %22 = math.tanh %21 : vector<64x128xf32>
    %c0_10 = arith.constant 0 : index
    %c0_11 = arith.constant 0 : index
    %23 = vector.load %arg4[%c0_10, %c0_11] : memref<64x128xf32, #tpu.memory_space<vmem>>, vector<64x128xf32>
    tpu.vector_store %arg4[%c0_10, %c0_11], %22 {strides = array<i32>} : memref<64x128xf32, #tpu.memory_space<vmem>>, vector<64x128xf32>,
    return
  }
  func.func @transform_0(%arg0: i32) -> (i32, i32) {
    %c0_i32 = arith.constant 0 : i32
    %c0_i32_0 = arith.constant 0 : i32
    return %arg0, %c0_i32 : i32, i32
  }
  func.func @transform_1(%arg0: i32) -> (i32, i32) {
    %c0_i32 = arith.constant 0 : i32
    %c0_i32_0 = arith.constant 0 : i32
    %c0_i32_1 = arith.constant 0 : i32
    return %c0_i32, %c0_i32_0 : i32, i32
  }
  func.func @transform_2(%arg0: i32) -> (i32, i32) {
    %c0_i32 = arith.constant 0 : i32
    %c0_i32_0 = arith.constant 0 : i32
    %c0_i32_1 = arith.constant 0 : i32
    return %c0_i32, %c0_i32_0 : i32, i32
  }
  func.func @transform_3(%arg0: i32) -> (i32, i32) {
    %c0_i32 = arith.constant 0 : i32
    %c0_i32_0 = arith.constant 0 : i32
    return %arg0, %c0_i32 : i32, i32
  }
}

</mosaic_0001>

<bundles_post_ra>
// kernel: tpu_custom_call.1
= control target key start
LH: loop header
LB: loop body
LE: loop exit
PB: predicated region body
PF: predicated region fallthrough
CT: control target
= control target key end

     0   :  { %s489_s0 = inlined_call_operand.vmem [shape: f32[64,32], index: 0, kind: input, shape index: {}]   ;;  %s490_s1 = inlined_call_operand.vmem [shape: f32[32,128], index: 1, kind: input, shape index: {}]   ;;  %s491_s2 = inlined_call_operand.vmem [shape: f32[1,128], index: 2, kind: input, shape index: {}]   ;;  %s492_s3 = inlined_call_operand.hbm [shape: f32[64,128], index: 3, kind: output, shape index: {}]  }
   0x1   :  { %v26_v0 = vld [vmem:[%s490_s1 + $0x18] sm:$0xff]  ;;  %v25_v1 = vld [vmem:[%s490_s1 + $0x10] sm:$0xff]  ;;  %v24_v2 = vld [vmem:[%s490_s1 + $0x8] sm:$0xff] }
   0x2   :  { %313 = vmatprep.subr.mxu0 %v26_v0  ;;  %333 = vmatprep.subr.mxu1 %v26_v0  ;;  %v23_v3 = vld [vmem:[%s490_s1] sm:$0xff] }
   0x3   :  { %314 = vmatpush3.msra.mxu0 %v26_v0  ;;  %337 = vmatpush3.msra.mxu1 %v26_v0 }
   0x4   :  { %315 = vmatprep.subr.mxu0 %v25_v1  ;;  %334 = vmatprep.subr.mxu1 %v25_v1 }
   0x5   :  { %316 = vmatpush3.msra.mxu0 %v25_v1  ;;  %338 = vmatpush3.msra.mxu1 %v25_v1 }
   0x6   :  { %8 = vsyncpa [#allocation3], 0  ;;  %317 = vmatprep.subr.mxu0 %v24_v2  ;;  %335 = vmatprep.subr.mxu1 %v24_v2  ;;  %v15_v4 = vld [vmem:[%s489_s0] sm:$0xff]  ;;  %vm34_vm0 = vcmask 261120   ;;  %v16_v6 = vld [vmem:[%s489_s0 + $0x8] sm:$0xff]  ;;  %s415_s10 = smov 96  }
   0x7   :  { %318 = vmatpush3.msra.mxu0 %v24_v2  ;;  %339 = vmatpush3.msra.mxu1 %v24_v2  ;;  %v19_v5 = vld [vmem:[%s489_s0 + $0x20] sm:$0xff]  ;;  %v20_v7 = vld [vmem:[%s489_s0 + $0x28] sm:$0xff]  ;;  %v17_v8 = vld [vmem:[%s489_s0 + $0x10] sm:$0xff] }
   0x8   :  { %319 = vmatprep.subr.mxu0 %v23_v3  ;;  %336 = vmatprep.subr.mxu1 %v23_v3  ;;  %v21_v9 = vld [vmem:[%s489_s0 + $0x30] sm:$0xff]  ;;  %v18_v10 = vld [vmem:[%s489_s0 + $0x18] sm:$0xff]  ;;  %v292_v12 = vld [vmem:[%s491_s2] ss:$0 sm:$0xff] }
   0x9   :  { %320 = vmatpush3.msra.mxu0 %v23_v3  ;;  %340 = vmatpush3.msra.mxu1 %v23_v3  ;;  %v22_v11 = vld [vmem:[%s489_s0 + $0x38] sm:$0xff]  ;;  %s416_s0 = smov [#allocation2]  }
   0xa   :  { %321 = vmatprep.mubr.msk.f32.mxu0 %vm34_vm0, %v15_v4  ;;  %327 = vmatprep.mubr.msk.f32.mxu1 %vm34_vm0, %v19_v5  ;;  %s281_s2 = sshll.u32 %s416_s0, 4  ;;  %s282_s2 = int_to_ptr.vmem [resolvable:$true] %s281_s2 }
   0xb   :  { %322 = vmatmul.mubr.msk.f32.vlgmr.msra.gmra.mxu0 %vm34_vm0, %v16_v6  ;;  %328 = vmatmul.mubr.msk.f32.vlgmr.msra.gmra.mxu1 %vm34_vm0, %v20_v7  ;;  %s393_s11 = scalar_lea.vmem %s282_s2, 1024  ;;  %p398_p1 = scmp.lt.s32.totalorder %s282_s2, %s282_s2 }
   0xc   :  { %324 = vmatprep.mubr.msk.f32.mxu0 %vm34_vm0, %v17_v8  ;;  %330 = vmatprep.mubr.msk.f32.mxu1 %vm34_vm0, %v21_v9  ;;  %p394_p0 = scmp.ne.s32.totalorder %s282_s2, %s393_s11  ;;  %p399_p2 = scmp.lt.s32.totalorder %s393_s11, %s393_s11 }
   0xe   :  { %p400_p3 = por %p399_p2, %p398_p1 }
   0xf   :  { %325 = vmatmul.mubr.msk.f32.gmra.mxu0 %vm34_vm0, %v18_v10  ;;  %331 = vmatmul.mubr.msk.f32.gmra.mxu1 %vm34_vm0, %v22_v11 }
  0x10   :  { %p401_p4 = pnand %p400_p3, %p394_p0 }
  0xcb   :  { %v323_v13 = vpop.f32.mrf.mxu0  ;;  %v329_v14 = vpop.f32.mrf.mxu1 }
  0xcc   :  { %v131_v15 = vadd.f32 %v323_v13, %v292_v12  ;;  %v151_v16 = vadd.f32 %v329_v14, %v292_v12 }
  0xcd   :  { %v125_v17 = vpop.f32.mrf.mxu0  ;;  %v145_v18 = vpop.f32.mrf.mxu1 }
  0xce   :  { %174 = vrot.lane.b32.xlu1 %v151_v16, %s415_s10  ;;  %166 = vrot.lane.b32.xlu0 %v131_v15, %s415_s10  ;;  %v126_v20 = vadd.f32 %v292_v12, %v125_v17  ;;  %v146_v24 = vadd.f32 %v292_v12, %v145_v18  ;;  %345 = vtanh.f32 %v131_v15 }
  0xcf   :  { %v326_v19 = vpop.f32.mrf.mxu0  ;;  %v332_v23 = vpop.f32.mrf.mxu1  ;;  %347 = vtanh.f32 %v151_v16 }
  0xd0   :  { %v141_v21 = vadd.f32 %v326_v19, %v292_v12  ;;  %v161_v27 = vadd.f32 %v332_v23, %v292_v12 }
  0xd1   :  { %v135_v22 = vpop.f32.mrf.mxu0  ;;  %v155_v26 = vpop.f32.mrf.mxu1 }
  0xd2   :  { %170 = vrot.lane.b32.xlu1 %v141_v21, %s415_s10  ;;  %164 = vrot.lane.b32.xlu0 %v126_v20, %s415_s10  ;;  %v136_v25 = vadd.f32 %v292_v12, %v135_v22  ;;  %v156_v28 = vadd.f32 %v292_v12, %v155_v26 }
  0xd6   :  { %168 = vrot.lane.b32.xlu1 %v136_v25, %s415_s10  ;;  %172 = vrot.lane.b32.xlu0 %v146_v24, %s415_s10 }
  0xda   :  { %178 = vrot.lane.b32.xlu1 %v161_v27, %s415_s10  ;;  %176 = vrot.lane.b32.xlu0 %v156_v28, %s415_s10 }
  0xdb   :  { %v346_v59 = vpop.eup %345 }
  0xdc   :  { %v348_v62 = vpop.eup %347  ;;  %v197_v11 = vadd.f32 0.1, %v346_v59 }
  0xdd   :  { %v201_v8 = vadd.f32 0.1, %v348_v62 }
 0x140   :  { %v175_v29 = vpop.permute.xlu1 %174  ;;  %v167_v30 = vpop.permute.xlu0 %166 }
 0x141   :  { %v193_v31 = vmax.f32 %v175_v29, 0.0  ;;  %v189_v32 = vmax.f32 %v167_v30, 0.0 }
 0x143   :  { %v209_v33 = vadd.f32 0.100001, %v193_v31  ;;  %v205_v34 = vadd.f32 0.100001, %v189_v32 }
 0x144   :  { %v171_v35 = vpop.permute.xlu1 %170  ;;  %v165_v36 = vpop.permute.xlu0 %164 }
 0x145   :  { %v217_v37 = vmax.f32 %v209_v33, 1e-05  ;;  %v213_v38 = vmax.f32 %v205_v34, 1e-05  ;;  %v191_v39 = vmax.f32 %v171_v35, 0.0  ;;  %v188_v40 = vmax.f32 %v165_v36, 0.0 }
 0x147   :  { %349 = vrcp.f32 %v217_v37  ;;  %v207_v41 = vadd.f32 0.100001, %v191_v39  ;;  %v204_v42 = vadd.f32 0.100001, %v188_v40 }
 0x148   :  { %351 = vrcp.f32 %v213_v38  ;;  %v169_v43 = vpop.permute.xlu1 %168  ;;  %v173_v44 = vpop.permute.xlu0 %172 }
 0x149   :  { %v215_v45 = vmax.f32 %v207_v41, 1e-05  ;;  %v212_v46 = vmax.f32 %v204_v42, 1e-05  ;;  %v190_v47 = vmax.f32 %v169_v43, 0.0  ;;  %v192_v48 = vmax.f32 %v173_v44, 0.0 }
 0x14a   :  { %353 = vtanh.f32 %v141_v21 }
 0x14b   :  { %355 = vrcp.f32 %v215_v45  ;;  %v206_v49 = vadd.f32 0.100001, %v190_v47  ;;  %v208_v50 = vadd.f32 0.100001, %v192_v48 }
 0x14c   :  { %357 = vrcp.f32 %v212_v46  ;;  %v179_v51 = vpop.permute.xlu1 %178  ;;  %v177_v52 = vpop.permute.xlu0 %176 }
 0x14d   :  { %v214_v53 = vmax.f32 %v206_v49, 1e-05  ;;  %v216_v54 = vmax.f32 %v208_v50, 1e-05  ;;  %v195_v55 = vmax.f32 %v179_v51, 0.0  ;;  %v194_v56 = vmax.f32 %v177_v52, 0.0 }
 0x14e   :  { %359 = vtanh.f32 %v126_v20 }
 0x14f   :  { %361 = vrcp.f32 %v214_v53  ;;  %v211_v57 = vadd.f32 0.100001, %v195_v55  ;;  %v210_v58 = vadd.f32 0.100001, %v194_v56 }
 0x150   :  { %363 = vrcp.f32 %v216_v54 }
 0x151   :  { %365 = vtanh.f32 %v136_v25  ;;  %v219_v60 = vmax.f32 %v211_v57, 1e-05  ;;  %v218_v61 = vmax.f32 %v210_v58, 1e-05 }
 0x152   :  { %367 = vtanh.f32 %v146_v24 }
 0x153   :  { %369 = vrcp.f32 %v219_v60 }
 0x154   :  { %v350_v63 = vpop.eup %349  ;;  %371 = vrcp.f32 %v218_v61 }
 0x155   :  { %v352_v0 = vpop.eup %351  ;;  %373 = vtanh.f32 %v161_v27  ;;  %v233_v1 = vmul.f32 %v350_v63, %v217_v37 }
 0x156   :  { %375 = vtanh.f32 %v156_v28  ;;  %v229_v2 = vmul.f32 %v352_v0, %v213_v38 }
 0x157   :  { %v354_v3 = vpop.eup %353  ;;  %v241_v4 = vsub.f32 2.0, %v233_v1 }
 0x158   :  { %v356_v5 = vpop.eup %355  ;;  %v237_v6 = vsub.f32 2.0, %v229_v2  ;;  %v199_v21 = vadd.f32 0.1, %v354_v3 }
 0x159   :  { %v358_v7 = vpop.eup %357  ;;  %v249_v9 = vmul.f32 %v350_v63, %v241_v4  ;;  %v231_v10 = vmul.f32 %v356_v5, %v215_v45 }
 0x15a   :  { %v245_v12 = vmul.f32 %v352_v0, %v237_v6  ;;  %v228_v13 = vmul.f32 %v358_v7, %v212_v46 }
 0x15b   :  { %v360_v14 = vpop.eup %359  ;;  %v257_v15 = vmul.f32 %v249_v9, %v201_v8  ;;  %v239_v16 = vsub.f32 2.0, %v231_v10 }
 0x15c   :  { %v362_v17 = vpop.eup %361  ;;  %v253_v18 = vmul.f32 %v245_v12, %v197_v11  ;;  %v236_v19 = vsub.f32 2.0, %v228_v13  ;;  %v196_v25 = vadd.f32 0.1, %v360_v14 }
 0x15d   :  { %v364_v20 = vpop.eup %363  ;;  %377 = vtanh.f32 %v257_v15  ;;  %v247_v22 = vmul.f32 %v356_v5, %v239_v16  ;;  %v230_v23 = vmul.f32 %v362_v17, %v214_v53 }
 0x15e   :  { %v366_v24 = vpop.eup %365  ;;  %379 = vtanh.f32 %v253_v18  ;;  %v244_v26 = vmul.f32 %v358_v7, %v236_v19  ;;  %v232_v27 = vmul.f32 %v364_v20, %v216_v54 }
 0x15f   :  { %v368_v28 = vpop.eup %367  ;;  %v255_v29 = vmul.f32 %v247_v22, %v199_v21  ;;  %v238_v30 = vsub.f32 2.0, %v230_v23  ;;  %v198_v35 = vadd.f32 0.1, %v366_v24 }
 0x160   :  { %v370_v31 = vpop.eup %369  ;;  %v252_v32 = vmul.f32 %v244_v26, %v196_v25  ;;  %v240_v33 = vsub.f32 2.0, %v232_v27  ;;  %v200_v39 = vadd.f32 0.1, %v368_v28 }
 0x161   :  { %v372_v34 = vpop.eup %371  ;;  %381 = vtanh.f32 %v255_v29  ;;  %v246_v36 = vmul.f32 %v362_v17, %v238_v30  ;;  %v235_v37 = vmul.f32 %v370_v31, %v219_v60 }
 0x162   :  { %v374_v38 = vpop.eup %373  ;;  %383 = vtanh.f32 %v252_v32  ;;  %v248_v40 = vmul.f32 %v364_v20, %v240_v33  ;;  %v234_v41 = vmul.f32 %v372_v34, %v218_v61 }
 0x163   :  { %v376_v42 = vpop.eup %375  ;;  %v254_v43 = vmul.f32 %v246_v36, %v198_v35  ;;  %v243_v44 = vsub.f32 2.0, %v235_v37  ;;  %v203_v47 = vadd.f32 0.1, %v374_v38 }
 0x164   :  { %v256_v45 = vmul.f32 %v248_v40, %v200_v39  ;;  %v242_v46 = vsub.f32 2.0, %v234_v41  ;;  %v202_v49 = vadd.f32 0.1, %v376_v42 }
 0x165   :  { %385 = vtanh.f32 %v254_v43  ;;  %v251_v48 = vmul.f32 %v370_v31, %v243_v44 }
 0x166   :  { %387 = vtanh.f32 %v256_v45  ;;  %v250_v50 = vmul.f32 %v372_v34, %v242_v46 }
 0x167   :  { %v259_v51 = vmul.f32 %v251_v48, %v203_v47 }
 0x168   :  { %v258_v52 = vmul.f32 %v250_v50, %v202_v49 }
 0x169   :  { %389 = vtanh.f32 %v259_v51 }
 0x16a   :  { %v378_v53 = vpop.eup %377  ;;  %391 = vtanh.f32 %v258_v52 }
 0x16b   :  { %v380_v54 = vpop.eup %379  ;;  %273 = vst [vmem:[#allocation2 + $0x28] sm:$0xff] %v378_v53 }
 0x16c   :  { %269 = vst [vmem:[#allocation2 + $0x8] sm:$0xff] %v380_v54 }
 0x16e   :  { %v382_v55 = vpop.eup %381 }
 0x16f   :  { %v384_v56 = vpop.eup %383  ;;  %271 = vst [vmem:[#allocation2 + $0x18] sm:$0xff] %v382_v55 }
 0x170   :  { %268 = vst [vmem:[#allocation2] sm:$0xff] %v384_v56 }
 0x172   :  { %v386_v57 = vpop.eup %385 }
 0x173   :  { %v388_v58 = vpop.eup %387  ;;  %270 = vst [vmem:[#allocation2 + $0x10] sm:$0xff] %v386_v57 }
 0x174   :  { %272 = vst [vmem:[#allocation2 + $0x20] sm:$0xff] %v388_v58 }
 0x176   :  { %v390_v59 = vpop.eup %389 }
 0x177   :  { %v392_v60 = vpop.eup %391  ;;  %275 = vst [vmem:[#allocation2 + $0x38] sm:$0xff] %v390_v59 }
 0x178   :  { %274 = vst [vmem:[#allocation2 + $0x30] sm:$0xff] %v392_v60 }
 0x179   :  { %404 = shalt.err (!%p401_p4)
}
 0x17a   :  { %s417_s12 = smov 128   ;;  %s418_s13 = smov 8  }
 0x17b   :  { %287 = dma.vmem_to_hbm [thread:$0]  %s282_s2, 1024, %s492_s3, [#allocation3], %s417_s12, %s417_s12, %s418_s13  }
 0x17c   :  { %413 = dma.done.wait [#allocation3], 1024  }
 0x17d   :  { %414 = vsyncadd [#allocation3], 4294966272 }
 0x17e   :  { %291 = vsyncpa [#allocation3], 1 }

</bundles_post_ra>
